<compile_context>
chip_gen: v6e
topology: v6e:2x2x1
jax: 0.10.0
libtpu: 0.0.40
codegen_flags: <defaults>
</compile_context>

<pallas_src>
import functools

import jax
import jax.numpy as jnp
from jax.experimental import pallas as pl
from jax.experimental.pallas import tpu as pltpu


_INV_SQRT2 = 0.7071067811865476


def _gelu_exact(x):
    # Exact GELU: 0.5 * x * (1 + erf(x / sqrt(2))) -- matches torch.nn.GELU().
    return 0.5 * x * (1.0 + jax.lax.erf(x * _INV_SQRT2))


def _round_up(n, m):
    return ((n + m - 1) // m) * m


def _cdiv(a, b):
    return (a + b - 1) // b


# ---------------------------------------------------------------------------
# Kernels
# ---------------------------------------------------------------------------

def _ffn_resident_kernel(x_ref, w1_ref, b1_ref, w2_ref, b2_ref, o_ref, *, mm_dtype):
    # x_ref : (TM, dim)          w1_ref: (dim, H2p)      b1_ref: (1, H2p) f32
    # w2_ref: (H2p, Hp)          b2_ref: (1, Hp) f32     o_ref : (TM, Hp)
    x = x_ref[...]
    w1 = w1_ref[...]
    w2 = w2_ref[...]
    if mm_dtype is not None:                      # opt-in bf16 MXU operands
        x = x.astype(mm_dtype)
        w1 = w1.astype(mm_dtype)
        w2 = w2.astype(mm_dtype)
    h = jnp.dot(x, w1, preferred_element_type=jnp.float32)
    h = _gelu_exact(h + b1_ref[...])
    h = h.astype(mm_dtype if mm_dtype is not None else w2_ref.dtype)
    y = jnp.dot(h, w2, preferred_element_type=jnp.float32)
    y = _gelu_exact(y + b2_ref[...])
    o_ref[...] = y.astype(o_ref.dtype)


def _ffn_ktiled_kernel(x_ref, w1_ref, b1_ref, w2_ref, b2_ref, o_ref, acc_ref, *,
                       mm_dtype):
    # Grid: (rows, h2-chunks); reduction over the 2*hidden axis into f32 scratch.
    # x_ref : (TM, dim)        w1_ref: (dim, TK)       b1_ref: (1, TK) f32
    # w2_ref: (TK, Hp)         b2_ref: (1, Hp) f32     o_ref : (TM, Hp)
    # acc_ref: (TM, Hp) f32 scratch
    k = pl.program_id(1)

    @pl.when(k == 0)
    def _init():
        acc_ref[...] = jnp.zeros_like(acc_ref)

    x = x_ref[...]
    w1 = w1_ref[...]
    w2 = w2_ref[...]
    if mm_dtype is not None:
        x = x.astype(mm_dtype)
        w1 = w1.astype(mm_dtype)
        w2 = w2.astype(mm_dtype)
    h = jnp.dot(x, w1, preferred_element_type=jnp.float32)
    h = _gelu_exact(h + b1_ref[...])              # chunk-local GELU is exact
    h = h.astype(mm_dtype if mm_dtype is not None else w2_ref.dtype)
    acc_ref[...] += jnp.dot(h, w2, preferred_element_type=jnp.float32)

    @pl.when(k == pl.num_programs(1) - 1)
    def _finalize():
        y = _gelu_exact(acc_ref[...] + b2_ref[...])
        o_ref[...] = y.astype(o_ref.dtype)


# ---------------------------------------------------------------------------
# Generation-aware VMEM budget / TensorCore count
# ---------------------------------------------------------------------------

def _chip_budget():
    kind = ""
    try:
        kind = jax.devices()[0].device_kind.lower()
    except Exception:
        pass
    vmem_cap = None
    try:
        vmem_cap = int(pltpu.get_tpu_info().vmem_capacity_bytes)
    except Exception:
        vmem_cap = None
    is_v7 = ("v7" in kind) or (vmem_cap is not None and vmem_cap <= (64 << 20))
    if vmem_cap is None:
        vmem_cap = (64 << 20) if is_v7 else (128 << 20)
    # Cores the 'parallel' grid axis shards across (v7x: 2 TCs; v4-class megacore).
    num_tc = 2 if (is_v7 or "v4" in kind) else 1
    # Usable scoped-VMEM budget with headroom for Mosaic internal scratch:
    # ~50 MiB on v7x (64 MiB physical), ~102 MiB on v5e/v6e (128 MiB physical).
    cap = min(int(vmem_cap * 0.8), vmem_cap - (14 << 20))
    return int(cap), int(num_tc)


def _balance_for_megacore(tile_m, M, m_ceil, sub, num_tc):
    """Only split/adjust the row grid where a parallel axis is actually sharded."""
    if num_tc <= 1 or m_ceil < num_tc * sub:
        return tile_m
    grid_m = _cdiv(M, tile_m)
    if grid_m % num_tc == 0:
        return tile_m
    target = _round_up(max(grid_m, num_tc), num_tc)
    new_tile = max(sub, _round_up(_cdiv(m_ceil, target), sub))
    return min(tile_m, new_tile)


# ---------------------------------------------------------------------------
# Wrapper
# ---------------------------------------------------------------------------

def feed_forward_sr64(x, w1, b1, w2, b2, *, use_bf16_matmul=False,
                      force_path=None, force_tk=None):
    """y = gelu(gelu(x @ w1 + b1) @ w2 + b2).

    x : (..., dim); w1: (dim, 2*hidden); b1: (2*hidden,);
    w2: (2*hidden, hidden); b2: (hidden,).  Returns (..., hidden).
    """
    orig_shape = x.shape
    dim = orig_shape[-1]
    hidden2 = w1.shape[1]
    hidden = w2.shape[1]
    assert w1.shape[0] == dim and w2.shape[0] == hidden2
    assert b1.shape[-1] == hidden2 and b2.shape[-1] == hidden

    x2d = x.reshape(-1, dim)
    M = x2d.shape[0]

    x_size = jnp.dtype(x.dtype).itemsize
    w_size = jnp.dtype(w1.dtype).itemsize
    out_dtype = x.dtype
    out_size = x_size
    mm_dtype = (jnp.bfloat16
                if (use_bf16_matmul and jnp.dtype(w1.dtype) == jnp.float32)
                else None)
    op_size = 2 if mm_dtype is not None else w_size   # dtype of the h cast copy

    sub = {2: 16, 1: 32}.get(x_size, 8)               # sublane packing per dtype
    m_ceil = _round_up(max(M, 1), sub)

    # Lane-dense feature dims (output stores are unmasked vst); gelu(0)=0 keeps
    # zero padding exact and the padding is sliced off at the end.
    h2_pad = _round_up(hidden2, 128)
    h_pad = _round_up(hidden, 128)

    # Pad weights/biases only when actually misaligned (callers can pre-pad once
    # at parameter setup to keep this out of the per-call hot path).
    w1p = w1 if h2_pad == hidden2 else jnp.pad(w1, ((0, 0), (0, h2_pad - hidden2)))
    if h2_pad == hidden2 and h_pad == hidden:
        w2p = w2
    else:
        w2p = jnp.pad(w2, ((0, h2_pad - hidden2), (0, h_pad - hidden)))
    b1p = b1.reshape(1, hidden2).astype(jnp.float32)
    if h2_pad != hidden2:
        b1p = jnp.pad(b1p, ((0, 0), (0, h2_pad - hidden2)))
    b2p = b2.reshape(1, hidden).astype(jnp.float32)
    if h_pad != hidden:
        b2p = jnp.pad(b2p, ((0, 0), (0, h_pad - hidden)))

    cap, num_tc = _chip_budget()
    slack = 6 << 20                                    # Mosaic internals headroom

    # Resident-weight footprint (single-buffered: constant index_map + Buffered(1))
    weight_res = (dim * h2_pad + h2_pad * h_pad) * w_size + (h2_pad + h_pad) * 4
    # Per-row working set: x/out double-buffered tiles + f32 h & gelu temps +
    # native-dtype cast copy of h + f32 y & gelu temps.
    per_row = (2 * dim * x_size + 2 * h_pad * out_size
               + 2 * h2_pad * 4 + h2_pad * op_size + 2 * h_pad * 4)

    if force_path is None:
        resident = weight_res + slack + per_row * sub <= cap
    else:
        resident = (force_path == "resident")

    cost = pl.CostEstimate(
        flops=int(2 * M * (dim * h2_pad + h2_pad * h_pad)),
        transcendentals=int(M * (h2_pad + h_pad)),
        bytes_accessed=int(M * dim * x_size + M * h_pad * out_size
                           + (dim * h2_pad + h2_pad * h_pad) * w_size),
    )

    if resident:
        # tile_m derived from the leftover budget (fewer, fatter grid steps).
        leftover = max(cap - slack - weight_res, per_row * sub)
        tile_m = (leftover // per_row) // sub * sub
        tile_m = int(max(sub, min(1024, tile_m, m_ceil)))
        tile_m = _balance_for_megacore(tile_m, M, m_ceil, sub, num_tc)
        grid_m = _cdiv(M, tile_m)     # ragged last block handled by Pallas masking

        const_kw = dict(pipeline_mode=pl.Buffered(buffer_count=1))
        kernel = functools.partial(_ffn_resident_kernel, mm_dtype=mm_dtype)
        out = pl.pallas_call(
            kernel,
            out_shape=jax.ShapeDtypeStruct((M, h_pad), out_dtype),
            grid_spec=pltpu.PrefetchScalarGridSpec(
                num_scalar_prefetch=0,
                grid=(grid_m,),
                in_specs=[
                    pl.BlockSpec((tile_m, dim), lambda i: (i, 0)),
                    pl.BlockSpec((dim, h2_pad), lambda i: (0, 0), **const_kw),
                    pl.BlockSpec((1, h2_pad), lambda i: (0, 0), **const_kw),
                    pl.BlockSpec((h2_pad, h_pad), lambda i: (0, 0), **const_kw),
                    pl.BlockSpec((1, h_pad), lambda i: (0, 0), **const_kw),
                ],
                out_specs=pl.BlockSpec((tile_m, h_pad), lambda i: (i, 0)),
            ),
            compiler_params=pltpu.CompilerParams(
                dimension_semantics=("parallel",),
                vmem_limit_bytes=int(cap)),
            cost_estimate=cost,
        )(x2d, w1p, b1p, w2p, b2p)
    else:
        # K-tiled path: chunk the 2*hidden axis; f32 VMEM accumulator scratch.
        tile_m = int(max(sub, (min(256, m_ceil) // sub) * sub))

        def step_bytes(tm, tk):
            return (2 * (dim * tk + tk * h_pad) * w_size     # dbl-buffered W chunks
                    + 2 * (tk + h_pad) * 4                   # biases
                    + 2 * tm * dim * x_size                  # x tile (dbl-buffered)
                    + 2 * tm * h_pad * out_size              # out tile (dbl-buffered)
                    + tm * h_pad * 4                         # acc scratch
                    + tm * tk * (8 + op_size)                # f32 h + temp + cast
                    + tm * h_pad * 4)                        # partial-product temp

        units = h2_pad // 128

        def pick_tk(tm):
            for d in range(units, 0, -1):                    # largest divisor first
                if units % d == 0 and step_bytes(tm, d * 128) + slack <= cap:
                    return d * 128
            return None

        if force_tk is not None:
            tk = max(128, (int(force_tk) // 128) * 128)
            while h2_pad % tk != 0:
                tk -= 128
        else:
            tk = pick_tk(tile_m)
            while tk is None and tile_m > sub:
                tile_m = max(sub, ((tile_m // 2) // sub) * sub)
                tk = pick_tk(tile_m)
            if tk is None:
                tk = 128  # best effort; TODO(synk): HBM-spill variant for extreme dims

        tile_m = _balance_for_megacore(tile_m, M, m_ceil, sub, num_tc)
        grid_m = _cdiv(M, tile_m)
        n_k = h2_pad // tk

        kernel = functools.partial(_ffn_ktiled_kernel, mm_dtype=mm_dtype)
        out = pl.pallas_call(
            kernel,
            out_shape=jax.ShapeDtypeStruct((M, h_pad), out_dtype),
            grid_spec=pltpu.PrefetchScalarGridSpec(
                num_scalar_prefetch=0,
                grid=(grid_m, n_k),
                in_specs=[
                    pl.BlockSpec((tile_m, dim), lambda i, k: (i, 0)),
                    pl.BlockSpec((dim, tk), lambda i, k: (0, k)),
                    pl.BlockSpec((1, tk), lambda i, k: (0, k)),
                    pl.BlockSpec((tk, h_pad), lambda i, k: (k, 0)),
                    pl.BlockSpec((1, h_pad), lambda i, k: (0, 0)),
                ],
                out_specs=pl.BlockSpec((tile_m, h_pad), lambda i, k: (i, 0)),
                scratch_shapes=[pltpu.VMEM((tile_m, h_pad), jnp.float32)],
            ),
            compiler_params=pltpu.CompilerParams(
                dimension_semantics=("parallel", "arbitrary"),
                vmem_limit_bytes=int(cap)),
            cost_estimate=cost,
        )(x2d, w1p, b1p, w2p, b2p)

    if h_pad != hidden:
        out = out[:, :hidden]
    return out.reshape(*orig_shape[:-1], hidden)


# ---------------------------------------------------------------------------
# Test harness
# ---------------------------------------------------------------------------

def _init_params(key, dim, hidden_dim, dtype=jnp.float32):
    """Deterministic init mimicking nn.Linear shapes (stored pre-transposed)."""
    k1, k2, k3, k4 = jax.random.split(key, 4)
    bound1 = 1.0 / (dim ** 0.5)
    bound2 = 1.0 / ((2 * hidden_dim) ** 0.5)
    w1 = jax.random.uniform(k1, (dim, 2 * hidden_dim), dtype, -bound1, bound1)
    b1 = jax.random.uniform(k2, (2 * hidden_dim,), dtype, -bound1, bound1)
    w2 = jax.random.uniform(k3, (2 * hidden_dim, hidden_dim), dtype, -bound2, bound2)
    b2 = jax.random.uniform(k4, (hidden_dim,), dtype, -bound2, bound2)
    return w1, b1, w2, b2


def _reference(x, w1, b1, w2, b2):
    h = jax.nn.gelu(x @ w1 + b1, approximate=False)
    return jax.nn.gelu(h @ w2 + b2, approximate=False)


if __name__ == "__main__":
    # Small shapes consistent with the module: tokens of width `dim`.
    batch, seq, dim, hidden_dim = 2, 8, 32, 32
    key = jax.random.PRNGKey(0)
    kx, kp = jax.random.split(key)
    x = jax.random.normal(kx, (batch, seq, dim), jnp.float32)
    w1, b1, w2, b2 = _init_params(kp, dim, hidden_dim)

    # Default (resident-weight) path.
    y = feed_forward_sr64(x, w1, b1, w2, b2)
    y = jax.block_until_ready(y)
    y_ref = _reference(x, w1, b1, w2, b2)
    assert y.shape == (batch, seq, hidden_dim)
    assert jnp.allclose(y, y_ref, atol=1e-5, rtol=1e-5), "resident path mismatch"

    # Exercise the K-tiled (large-weight) fallback path with >1 reduction chunk.
    dim2, hidden_dim2 = 64, 128
    x2 = jax.random.normal(kx, (batch, seq, dim2), jnp.float32)
    w1b, b1b, w2b, b2b = _init_params(kp, dim2, hidden_dim2)
    y2 = feed_forward_sr64(x2, w1b, b1b, w2b, b2b, force_path="ktiled", force_tk=128)
    y2 = jax.block_until_ready(y2)
    y2_ref = _reference(x2, w1b, b1b, w2b, b2b)
    assert y2.shape == (batch, seq, hidden_dim2)
    assert jnp.allclose(y2, y2_ref, atol=1e-5, rtol=1e-5), "ktiled path mismatch"

    print("KERNEL_OK")
</pallas_src>

<mosaic_0001>
module attributes {stable_mosaic.version = 11 : i64} {
  func.func @_ffn_resident_kernel(%arg0: i32, %arg1: memref<16x32xf32, #tpu.memory_space<vmem>>, %arg2: memref<32x128xf32, #tpu.memory_space<vmem>>, %arg3: memref<1x128xf32, #tpu.memory_space<vmem>>, %arg4: memref<128x128xf32, #tpu.memory_space<vmem>>, %arg5: memref<1x128xf32, #tpu.memory_space<vmem>>, %arg6: memref<16x128xf32, #tpu.memory_space<vmem>>) attributes {dimension_semantics = [#tpu.dimension_semantics<parallel>], iteration_bounds = array<i64: 1>, scalar_prefetch = 0 : i64, scratch_operands = 0 : i64, tpu.core_type = #tpu.core_type<tc>, window_params = [{transform_indices = @transform_0, window_bounds = array<i64: 16, 32>}, {pipeline_mode = #tpu.pipeline_mode<synchronous>, transform_indices = @transform_1, window_bounds = array<i64: 32, 128>}, {pipeline_mode = #tpu.pipeline_mode<synchronous>, transform_indices = @transform_2, window_bounds = array<i64: 1, 128>}, {pipeline_mode = #tpu.pipeline_mode<synchronous>, transform_indices = @transform_3, window_bounds = array<i64: 128, 128>}, {pipeline_mode = #tpu.pipeline_mode<synchronous>, transform_indices = @transform_4, window_bounds = array<i64: 1, 128>}, {transform_indices = @transform_5, window_bounds = array<i64: 16, 128>}]} {
    %c0 = arith.constant 0 : index
    %c0_0 = arith.constant 0 : index
    %0 = vector.load %arg1[%c0, %c0_0] : memref<16x32xf32, #tpu.memory_space<vmem>>, vector<16x32xf32>
    %c0_1 = arith.constant 0 : index
    %c0_2 = arith.constant 0 : index
    %1 = vector.load %arg2[%c0_1, %c0_2] : memref<32x128xf32, #tpu.memory_space<vmem>>, vector<32x128xf32>
    %c0_3 = arith.constant 0 : index
    %c0_4 = arith.constant 0 : index
    %2 = vector.load %arg4[%c0_3, %c0_4] : memref<128x128xf32, #tpu.memory_space<vmem>>, vector<128x128xf32>
    %cst = arith.constant dense<0.000000e+00> : vector<16x128xf32>
    %3 = tpu.matmul %0, %1, %cst {dimension_numbers = #tpu.dot_dimension_numbers<[1], [0], [0], [1], [0, 0, 1, 1], [], []>} : vector<16x32xf32>, vector<32x128xf32>, vector<16x128xf32> -> vector<16x128xf32>
    %c0_5 = arith.constant 0 : index
    %c0_6 = arith.constant 0 : index
    %4 = vector.load %arg3[%c0_5, %c0_6] : memref<1x128xf32, #tpu.memory_space<vmem>>, vector<1x128xf32>
    %5 = vector.broadcast %4 : vector<1x128xf32> to vector<16x128xf32>
    %6 = arith.addf %3, %5 : vector<16x128xf32>
    %cst_7 = arith.constant 5.000000e-01 : f32
    %7 = vector.broadcast %cst_7 : f32 to vector<16x128xf32>
    %8 = arith.mulf %7, %6 : vector<16x128xf32>
    %cst_8 = arith.constant 0.707106769 : f32
    %9 = vector.broadcast %cst_8 : f32 to vector<16x128xf32>
    %10 = arith.mulf %6, %9 : vector<16x128xf32>
    %11 = math.erf %10 : vector<16x128xf32>
    %cst_9 = arith.constant 1.000000e+00 : f32
    %12 = vector.broadcast %cst_9 : f32 to vector<16x128xf32>
    %13 = arith.addf %12, %11 : vector<16x128xf32>
    %14 = arith.mulf %8, %13 : vector<16x128xf32>
    %cst_10 = arith.constant dense<0.000000e+00> : vector<16x128xf32>
    %15 = tpu.matmul %14, %2, %cst_10 {dimension_numbers = #tpu.dot_dimension_numbers<[1], [0], [0], [1], [0, 0, 1, 1], [], []>} : vector<16x128xf32>, vector<128x128xf32>, vector<16x128xf32> -> vector<16x128xf32>
    %c0_11 = arith.constant 0 : index
    %c0_12 = arith.constant 0 : index
    %16 = vector.load %arg5[%c0_11, %c0_12] : memref<1x128xf32, #tpu.memory_space<vmem>>, vector<1x128xf32>
    %17 = vector.broadcast %16 : vector<1x128xf32> to vector<16x128xf32>
    %18 = arith.addf %15, %17 : vector<16x128xf32>
    %cst_13 = arith.constant 5.000000e-01 : f32
    %19 = vector.broadcast %cst_13 : f32 to vector<16x128xf32>
    %20 = arith.mulf %19, %18 : vector<16x128xf32>
    %cst_14 = arith.constant 0.707106769 : f32
    %21 = vector.broadcast %cst_14 : f32 to vector<16x128xf32>
    %22 = arith.mulf %18, %21 : vector<16x128xf32>
    %23 = math.erf %22 : vector<16x128xf32>
    %cst_15 = arith.constant 1.000000e+00 : f32
    %24 = vector.broadcast %cst_15 : f32 to vector<16x128xf32>
    %25 = arith.addf %24, %23 : vector<16x128xf32>
    %26 = arith.mulf %20, %25 : vector<16x128xf32>
    %c0_16 = arith.constant 0 : index
    %c0_17 = arith.constant 0 : index
    %27 = vector.load %arg6[%c0_16, %c0_17] : memref<16x128xf32, #tpu.memory_space<vmem>>, vector<16x128xf32>
    tpu.vector_store %arg6[%c0_16, %c0_17], %26 {strides = array<i32>} : memref<16x128xf32, #tpu.memory_space<vmem>>, vector<16x128xf32>,
    return
  }
  func.func @transform_0(%arg0: i32) -> (i32, i32) {
    %c0_i32 = arith.constant 0 : i32
    %c0_i32_0 = arith.constant 0 : i32
    return %arg0, %c0_i32 : i32, i32
  }
  func.func @transform_1(%arg0: i32) -> (i32, i32) {
    %c0_i32 = arith.constant 0 : i32
    %c0_i32_0 = arith.constant 0 : i32
    %c0_i32_1 = arith.constant 0 : i32
    return %c0_i32, %c0_i32_0 : i32, i32
  }
  func.func @transform_2(%arg0: i32) -> (i32, i32) {
    %c0_i32 = arith.constant 0 : i32
    %c0_i32_0 = arith.constant 0 : i32
    %c0_i32_1 = arith.constant 0 : i32
    return %c0_i32, %c0_i32_0 : i32, i32
  }
  func.func @transform_3(%arg0: i32) -> (i32, i32) {
    %c0_i32 = arith.constant 0 : i32
    %c0_i32_0 = arith.constant 0 : i32
    %c0_i32_1 = arith.constant 0 : i32
    return %c0_i32, %c0_i32_0 : i32, i32
  }
  func.func @transform_4(%arg0: i32) -> (i32, i32) {
    %c0_i32 = arith.constant 0 : i32
    %c0_i32_0 = arith.constant 0 : i32
    %c0_i32_1 = arith.constant 0 : i32
    return %c0_i32, %c0_i32_0 : i32, i32
  }
  func.func @transform_5(%arg0: i32) -> (i32, i32) {
    %c0_i32 = arith.constant 0 : i32
    %c0_i32_0 = arith.constant 0 : i32
    return %arg0, %c0_i32 : i32, i32
  }
}

</mosaic_0001>

<bundles_post_ra>
// kernel: tpu_custom_call.1
= control target key start
LH: loop header
LB: loop body
LE: loop exit
PB: predicated region body
PF: predicated region fallthrough
CT: control target
= control target key end

     0   :  { %10 = vsyncpa [#allocation3], 0  ;;  %s537_s0 = inlined_call_operand.hbm [shape: f32[16,32], index: 0, kind: input, shape index: {}]   ;;  %s538_s1 = inlined_call_operand.hbm [shape: f32[32,128], index: 1, kind: input, shape index: {}]   ;;  %s539_s2 = inlined_call_operand.vmem [shape: f32[1,128], index: 2, kind: input, shape index: {}]   ;;  %s540_s3 = inlined_call_operand.hbm [shape: f32[128,128], index: 3, kind: input, shape index: {}]   ;;  %s541_s4 = inlined_call_operand.vmem [shape: f32[1,128], index: 4, kind: input, shape index: {}]   ;;  %s542_s5 = inlined_call_operand.hbm [shape: f32[16,128], index: 5, kind: output, shape index: {}]  }
   0x1   :  { %11 = vsyncpa [#allocation6], 0 }
   0x2   :  { %12 = vsyncpa [#allocation4], 0  ;;  %s469_s18 = smov [#allocation5]   ;;  %s470_s20 = smov [#allocation2]  }
   0x3   :  { %s30_s19 = sshll.u32 %s469_s18, 4  ;;  %s18_s21 = sshll.u32 %s470_s20, 4  ;;  %s31_s19 = int_to_ptr.vmem [resolvable:$true] %s30_s19  ;;  %s19_s21 = int_to_ptr.vmem [resolvable:$true] %s18_s21 }
   0x4   :  { %s391_s22 = scalar_lea.vmem %s31_s19, 512  ;;  %p396_p1 = scmp.lt.s32.totalorder %s31_s19, %s31_s19 }
   0x5   :  { %p392_p0 = scmp.ne.s32.totalorder %s31_s19, %s391_s22  ;;  %p397_p2 = scmp.lt.s32.totalorder %s391_s22, %s391_s22 }
   0x7   :  { %p398_p3 = por %p397_p2, %p396_p1 }
   0x9   :  { %p399_p4 = pnand %p398_p3, %p392_p0 }
   0xb   :  { %402 = shalt.err (!%p399_p4)
}
   0xc   :  { %s471_s23 = smov 128   ;;  %s472_s24 = smov 8  }
   0xd   :  { %36 = dma.hbm_to_vmem [thread:$0]  %s538_s1, 512, %s31_s19, [#allocation6], %s471_s23, %s471_s23, %s472_s24  }
   0xe   :  { %s411_s27 = scalar_lea.vmem %s19_s21, 256  ;;  %p416_p6 = scmp.lt.s32.totalorder %s19_s21, %s19_s21 }
   0xf   :  { %p412_p5 = scmp.ne.s32.totalorder %s19_s21, %s411_s27  ;;  %p417_p7 = scmp.lt.s32.totalorder %s411_s27, %s411_s27 }
  0x11   :  { %p418_p8 = por %p417_p7, %p416_p6 }
  0x13   :  { %p419_p9 = pnand %p418_p8, %p412_p5 }
  0x15   :  { %422 = shalt.err (!%p419_p9)
}
  0x16   :  { %24 = dma.hbm_to_vmem [thread:$0]  %s537_s0, 256, %s19_s21, [#allocation3], %s471_s23, %s471_s23, %s472_s24  }
  0x17   :  { %s473_s30 = smov [#allocation7]  }
  0x18   :  { %s44_s6 = sshll.u32 %s473_s30, 4  ;;  %s45_s6 = int_to_ptr.vmem [resolvable:$true] %s44_s6 }
  0x19   :  { %s431_s7 = scalar_lea.vmem %s45_s6, 2048  ;;  %p436_p11 = scmp.lt.s32.totalorder %s45_s6, %s45_s6 }
  0x1a   :  { %p432_p10 = scmp.ne.s32.totalorder %s45_s6, %s431_s7  ;;  %p437_p12 = scmp.lt.s32.totalorder %s431_s7, %s431_s7 }
  0x1c   :  { %p438_p13 = por %p437_p12, %p436_p11 }
  0x1e   :  { %p439_p0 = pnand %p438_p13, %p432_p10 }
  0x20   :  { %442 = shalt.err (!%p439_p0)
}
  0x21   :  { %50 = dma.hbm_to_vmem [thread:$0]  %s540_s3, 2048, %s45_s6, [#allocation6], %s471_s23, %s471_s23, %s472_s24  }
  0x22   :  { %463 = dma.done.wait [#allocation3], 256  }
  0x23   :  { %464 = vsyncadd [#allocation3], 4294967040 }
  0x24   :  { %465 = dma.done.wait [#allocation6], 2560  }
  0x25   :  { %466 = vsyncadd [#allocation6], 4294964736  ;;  %vm91_vm0 = vcmask 261120   ;;  %v67_v0 = vld [vmem:[#allocation5 + $0x18] sm:$0xff]  ;;  %v66_v1 = vld [vmem:[#allocation5 + $0x10] sm:$0xff]  ;;  %s474_s10 = smov [#allocation8]  }
  0x26   :  { %323 = vmatprep.subr.mxu0 %v67_v0  ;;  %v62_v2 = vld [vmem:[#allocation2] sm:$0xff]  ;;  %v65_v3 = vld [vmem:[#allocation5 + $0x8] sm:$0xff]  ;;  %v83_v4 = vld [vmem:[#allocation7 + $0x78] sm:$0xff]  ;;  %s282_s11 = sshll.u32 %s474_s10, 4  ;;  %s283_s11 = int_to_ptr.vmem [resolvable:$true] %s282_s11 }
  0x27   :  { %324 = vmatpush3.msra.mxu0 %v67_v0  ;;  %331 = vmatprep.mubr.msk.f32.mxu0 %vm91_vm0, %v62_v2  ;;  %v82_v5 = vld [vmem:[#allocation7 + $0x70] sm:$0xff]  ;;  %v64_v6 = vld [vmem:[#allocation5] sm:$0xff]  ;;  %v81_v7 = vld [vmem:[#allocation7 + $0x68] sm:$0xff]  ;;  %p448_p2 = scmp.lt.s32.totalorder %s283_s11, %s283_s11 }
  0x28   :  { %325 = vmatprep.subr.mxu0 %v66_v1  ;;  %334 = vmatprep.subr.mxu1 %v83_v4  ;;  %v63_v8 = vld [vmem:[#allocation2 + $0x8] sm:$0xff]  ;;  %v80_v9 = vld [vmem:[#allocation7 + $0x60] sm:$0xff]  ;;  %v78_v11 = vld [vmem:[#allocation7 + $0x50] sm:$0xff] }
  0x29   :  { %326 = vmatpush3.msra.mxu0 %v66_v1  ;;  %335 = vmatpush3.msra.mxu1 %v83_v4  ;;  %v79_v10 = vld [vmem:[#allocation7 + $0x58] sm:$0xff]  ;;  %v77_v12 = vld [vmem:[#allocation7 + $0x48] sm:$0xff]  ;;  %v76_v13 = vld [vmem:[#allocation7 + $0x40] sm:$0xff] }
  0x2a   :  { %327 = vmatprep.subr.mxu0 %v65_v3  ;;  %336 = vmatprep.subr.mxu1 %v82_v5  ;;  %v75_v14 = vld [vmem:[#allocation7 + $0x38] sm:$0xff]  ;;  %v74_v15 = vld [vmem:[#allocation7 + $0x30] sm:$0xff]  ;;  %v73_v16 = vld [vmem:[#allocation7 + $0x28] sm:$0xff] }
  0x2b   :  { %328 = vmatpush3.msra.mxu0 %v65_v3  ;;  %337 = vmatpush3.msra.mxu1 %v82_v5  ;;  %v72_v17 = vld [vmem:[#allocation7 + $0x20] sm:$0xff]  ;;  %v71_v18 = vld [vmem:[#allocation7 + $0x18] sm:$0xff]  ;;  %v70_v19 = vld [vmem:[#allocation7 + $0x10] sm:$0xff] }
  0x2c   :  { %329 = vmatprep.subr.mxu0 %v64_v6  ;;  %338 = vmatprep.subr.mxu1 %v81_v7  ;;  %v69_v20 = vld [vmem:[#allocation7 + $0x8] sm:$0xff]  ;;  %v68_v21 = vld [vmem:[#allocation7] sm:$0xff]  ;;  %v295_v22 = vld [vmem:[%s539_s2] ss:$0 sm:$0xff] }
  0x2d   :  { %330 = vmatpush3.msra.mxu0 %v64_v6  ;;  %339 = vmatpush3.msra.mxu1 %v81_v7  ;;  %v298_v37 = vld [vmem:[%s541_s4] ss:$0 sm:$0xff]  ;;  %s443_s4 = scalar_lea.vmem %s283_s11, 256 }
  0x2e   :  { %332 = vmatmul.mubr.msk.f32.vlgmr.msra.gmra.mxu0 %vm91_vm0, %v63_v8  ;;  %340 = vmatprep.subr.mxu1 %v80_v9  ;;  %p444_p1 = scmp.ne.s32.totalorder %s283_s11, %s443_s4  ;;  %p449_p3 = scmp.lt.s32.totalorder %s443_s4, %s443_s4 }
  0x2f   :  { %341 = vmatpush3.msra.mxu1 %v80_v9 }
  0x30   :  { %342 = vmatprep.subr.mxu1 %v79_v10  ;;  %p450_p4 = por %p449_p3, %p448_p2 }
  0x31   :  { %343 = vmatpush3.msra.mxu1 %v79_v10 }
  0x32   :  { %344 = vmatprep.subr.mxu1 %v78_v11  ;;  %p451_p5 = pnand %p450_p4, %p444_p1 }
  0x33   :  { %345 = vmatpush3.msra.mxu1 %v78_v11 }
  0x34   :  { %346 = vmatprep.subr.mxu1 %v77_v12 }
  0x35   :  { %347 = vmatpush3.msra.mxu1 %v77_v12 }
  0x36   :  { %348 = vmatprep.subr.mxu1 %v76_v13 }
  0x37   :  { %349 = vmatpush3.msra.mxu1 %v76_v13 }
  0x38   :  { %350 = vmatprep.subr.mxu1 %v75_v14 }
  0x39   :  { %351 = vmatpush3.msra.mxu1 %v75_v14 }
  0x3a   :  { %352 = vmatprep.subr.mxu1 %v74_v15 }
  0x3b   :  { %353 = vmatpush3.msra.mxu1 %v74_v15 }
  0x3c   :  { %354 = vmatprep.subr.mxu1 %v73_v16 }
  0x3d   :  { %355 = vmatpush3.msra.mxu1 %v73_v16 }
  0x3e   :  { %356 = vmatprep.subr.mxu1 %v72_v17 }
  0x3f   :  { %357 = vmatpush3.msra.mxu1 %v72_v17 }
  0x40   :  { %358 = vmatprep.subr.mxu1 %v71_v18 }
  0x41   :  { %359 = vmatpush3.msra.mxu1 %v71_v18 }
  0x42   :  { %360 = vmatprep.subr.mxu1 %v70_v19 }
  0x43   :  { %361 = vmatpush3.msra.mxu1 %v70_v19 }
  0x44   :  { %362 = vmatprep.subr.mxu1 %v69_v20 }
  0x45   :  { %363 = vmatpush3.msra.mxu1 %v69_v20 }
  0x46   :  { %364 = vmatprep.subr.mxu1 %v68_v21 }
  0x47   :  { %365 = vmatpush3.msra.mxu1 %v68_v21 }
  0xee   :  { %v333_v23 = vpop.f32.mrf.mxu0 }
  0xef   :  { %v170_v24 = vadd.f32 %v333_v23, %v295_v22 }
  0xf0   :  { %v164_v25 = vpop.f32.mrf.mxu0 }
  0xf1   :  { %v176_v26 = vmul.f32 0.70710677, %v170_v24  ;;  %v165_v27 = vadd.f32 %v295_v22, %v164_v25  ;;  %v174_v34 = vmul.f32 0.5, %v170_v24 }
  0xf3   :  { %375 = verf.f32 %v176_v26  ;;  %v175_v28 = vmul.f32 0.70710677, %v165_v27  ;;  %v173_v32 = vmul.f32 0.5, %v165_v27 }
  0xf5   :  { %377 = verf.f32 %v175_v28 }
 0x100   :  { %v376_v29 = vpop.eup %375 }
 0x101   :  { %v180_v31 = vadd.f32 1.0, %v376_v29 }
 0x102   :  { %v378_v30 = vpop.eup %377 }
 0x103   :  { %v179_v33 = vadd.f32 1.0, %v378_v30  ;;  %v182_v36 = vmul.f32 %v180_v31, %v174_v34 }
 0x105   :  { %v181_v35 = vmul.f32 %v179_v33, %v173_v32 }
 0x107   :  { %366 = vmatprep.mubr.f32.mxu1 %v181_v35 }
 0x108   :  { %367 = vmatmul.mubr.f32.vlgmr.msra.gmra.mxu1 %v182_v36 }
 0x1c8   :  { %v368_v38 = vpop.f32.mrf.mxu1 }
 0x1c9   :  { %v262_v39 = vadd.f32 %v368_v38, %v298_v37 }
 0x1ca   :  { %v256_v40 = vpop.f32.mrf.mxu1 }
 0x1cb   :  { %v268_v41 = vmul.f32 0.70710677, %v262_v39  ;;  %v257_v42 = vadd.f32 %v298_v37, %v256_v40  ;;  %v266_v45 = vmul.f32 0.5, %v262_v39 }
 0x1cd   :  { %379 = verf.f32 %v268_v41  ;;  %v267_v43 = vmul.f32 0.70710677, %v257_v42  ;;  %v265_v49 = vmul.f32 0.5, %v257_v42 }
 0x1cf   :  { %381 = verf.f32 %v267_v43 }
 0x1da   :  { %v380_v44 = vpop.eup %379 }
 0x1db   :  { %v272_v46 = vadd.f32 1.0, %v380_v44 }
 0x1dc   :  { %v382_v47 = vpop.eup %381 }
 0x1dd   :  { %v274_v48 = vmul.f32 %v272_v46, %v266_v45  ;;  %v271_v50 = vadd.f32 1.0, %v382_v47 }
 0x1df   :  { %276 = vst [vmem:[#allocation8 + $0x8] sm:$0xff] %v274_v48  ;;  %v273_v51 = vmul.f32 %v271_v50, %v265_v49 }
 0x1e1   :  { %275 = vst [vmem:[#allocation8] sm:$0xff] %v273_v51 }
 0x1e2   :  { %454 = shalt.err (!%p451_p5)
}
 0x1e3   :  { %288 = dma.vmem_to_hbm [thread:$0]  %s283_s11, 256, %s542_s5, [#allocation4], %s471_s23, %s471_s23, %s472_s24  }
 0x1e4   :  { %467 = dma.done.wait [#allocation4], 256  }
 0x1e5   :  { %468 = vsyncadd [#allocation4], 4294967040 }
 0x1e6   :  { %292 = vsyncpa [#allocation3], 1 }
 0x1e7   :  { %293 = vsyncpa [#allocation6], 1 }
 0x1e8   :  { %294 = vsyncpa [#allocation4], 1 }

</bundles_post_ra>
